<compile_context>
chip_gen: v7x
topology: tpu7x:2x2x1
jax: 0.10.0
libtpu: 0.0.40
codegen_flags: <defaults>
</compile_context>

<pallas_src>
import numpy as np
import jax
import jax.numpy as jnp
from jax.experimental import pallas as pl
from jax.experimental.pallas import tpu as pltpu

BN_EPS = 1e-5
FN_EPS = 1e-4  # fast_normalize eps (EfficientDet-style fast normalized fusion)

TARGET_PIXELS_PER_STEP = 2048  # amortizes per-grid-step pipeline overhead


def _round_up(x, m):
    return ((x + m - 1) // m) * m


def _pick_tile_h(h, w):
    """Row-tile for level 0: multiple of 8 that divides h (or h itself),
    targeting ~TARGET_PIXELS_PER_STEP output pixels per grid step."""
    if h % 8 != 0:
        return h
    rows = -(-TARGET_PIXELS_PER_STEP // max(w, 1))      # ceil
    th = min(h, max(8, _round_up(rows, 8)))
    th -= th % 8
    while th > 8 and h % th != 0:
        th -= 8
    if th < 8 or h % th != 0:
        return h
    return th


# ----------------------------- Pallas kernel ---------------------------------

def _make_eed_kernel(num_levels):
    """Fused kernel for one (batch, level-0 row tile) grid point.

    refs = [b_all(SMEM),
            x0(1,C0,TH,W0), w0(C0,1,W0),
            (xj(1,Cj,hj,wj), wj(Cj,1,wj), ah(TH,hj), awt(wj,W0)) for j=1..L-1,
            out(1,TH,W0)]
    """
    def kernel(*refs):
        b_ref = refs[0]
        x0_ref, w0_ref = refs[1], refs[2]
        o_ref = refs[-1]

        # Level 0: VPU channel reduction, lane-dense (TH, W0) result.
        x0 = x0_ref[0].astype(jnp.float32)                       # (C0, TH, W0)
        acc = jnp.sum(x0 * w0_ref[...], axis=0) + b_ref[0]       # (TH, W0)

        # Deep levels: tiny channel reduction + bilinear upsample via two
        # small matmuls, accumulated in VMEM (never written per-level to HBM).
        for j in range(1, num_levels):
            base = 3 + 4 * (j - 1)
            xj_ref, wj_ref, ah_ref, awt_ref = refs[base:base + 4]
            xj = xj_ref[0].astype(jnp.float32)                    # (Cj, hj, wj)
            sj = jnp.sum(xj * wj_ref[...], axis=0) + b_ref[j]     # (hj, wj)
            t = jnp.dot(sj, awt_ref[...],
                        preferred_element_type=jnp.float32)       # (hj, W0)
            acc = acc + jnp.dot(ah_ref[...], t,
                                preferred_element_type=jnp.float32)  # (TH, W0)

        o_ref[0] = acc
    return kernel


# ------------------------------- helpers --------------------------------------

def fast_normalize(w, dim=0, eps=FN_EPS):
    w = jnp.maximum(w, 0.0)
    return w / (jnp.sum(w, axis=dim, keepdims=True) + eps)


def bilinear_matrix(out_size, in_size):
    """Interp matrix matching F.interpolate(mode='bilinear', align_corners=False)."""
    a = np.zeros((out_size, in_size), np.float32)
    scale = in_size / out_size
    for i in range(out_size):
        src = max((i + 0.5) * scale - 0.5, 0.0)
        i0 = min(int(np.floor(src)), in_size - 1)
        i1 = min(i0 + 1, in_size - 1)
        frac = src - i0
        a[i, i0] += 1.0 - frac
        a[i, i1] += frac
    return a


def fold_bn(conv_w, gamma, beta, mean, var):
    # conv_w: (Cout, Cin) from a bias-free 1x1 conv followed by eval-mode BN.
    scale = gamma / jnp.sqrt(var + BN_EPS)
    w_folded = (conv_w * scale[:, None]).T            # (Cin, Cout)
    b_folded = beta - mean * scale                    # (Cout,)
    return w_folded.astype(jnp.float32), b_folded.astype(jnp.float32)


def init_params(key, in_channels_list, f_channels, num_fpn_layers):
    n = len(in_channels_list)
    keys = list(jax.random.split(key, 16 * n + 8))
    ki = iter(keys)
    lats, sides = [], []
    for c in in_channels_list:                        # Conv2d(c, f, 1, norm='bn')
        w = jax.random.normal(next(ki), (f_channels, c), jnp.float32) * 0.1
        gamma = 1.0 + 0.1 * jax.random.normal(next(ki), (f_channels,), jnp.float32)
        beta = 0.1 * jax.random.normal(next(ki), (f_channels,), jnp.float32)
        mean = 0.1 * jax.random.normal(next(ki), (f_channels,), jnp.float32)
        var = 0.5 + jax.random.uniform(next(ki), (f_channels,), jnp.float32)
        lats.append(fold_bn(w, gamma, beta, mean, var))
    for _ in range(n):                                # SideHead Conv2d(f, 1, 1, norm='default')
        w = jax.random.normal(next(ki), (1, f_channels), jnp.float32) * 0.1
        gamma = 1.0 + 0.1 * jax.random.normal(next(ki), (1,), jnp.float32)
        beta = 0.1 * jax.random.normal(next(ki), (1,), jnp.float32)
        mean = 0.1 * jax.random.normal(next(ki), (1,), jnp.float32)
        var = 0.5 + jax.random.uniform(next(ki), (1,), jnp.float32)
        wf, bf = fold_bn(w, gamma, beta, mean, var)   # wf: (f, 1), bf: (1,)
        sides.append((wf.T, bf))                      # store as ((1, f), (1,))
    return {
        'lats': lats,
        'sides': sides,
        'eed_weights': jnp.ones((num_fpn_layers + 1, n), jnp.float32),  # as in __init__
        'head_weight': jnp.ones((n,), jnp.float32),                     # as in __init__
    }


# ------------------------------ EED forward -----------------------------------

def eed_forward(features_nchw, params, num_fpn_layers):
    num_levels = len(features_nchw)

    # dropout(p=0.0) == identity.
    ws = fast_normalize(params['eed_weights'], dim=1)     # (L+1, num_levels)
    # identity BiFPN -> per-level stage fusion collapses to one scalar per level
    stage_scale = jnp.sum(ws, axis=0)                     # (num_levels,)
    hw = fast_normalize(params['head_weight'])            # (num_levels,)

    x0 = features_nchw[0]                                 # largest (target) level
    n, c0, h0, w0 = x0.shape
    th0 = _pick_tile_h(h0, w0)

    # Fold (lateral conv+BN, stage scale, side conv+BN, head weight) per level
    # into a (Cin,) vector + scalar bias.  Exact because everything is linear.
    b_list, w_bcast = [], []
    for j, x in enumerate(features_nchw):
        wf, bf = params['lats'][j]                        # (Cin, F), (F,)
        wc_row, bc = params['sides'][j]                   # (1, F),   (1,)
        scale = stage_scale[j] * hw[j]
        w_eff = (wf @ wc_row[0]) * scale                              # (Cin,)
        b_tot = scale * jnp.sum(wc_row[0] * bf) + hw[j] * bc[0]       # scalar
        b_list.append(b_tot)
        cj, wj_width = x.shape[1], x.shape[3]
        # Pre-broadcast along the lane dim so the in-kernel broadcast is the
        # standard sublane (row) broadcast; tiny array, fetched once.
        w_bcast.append(jnp.broadcast_to(
            w_eff[:, None, None], (cj, 1, wj_width)).astype(jnp.float32))
    b_all = jnp.stack(b_list).astype(jnp.float32)         # (num_levels,)

    args = [b_all, x0, w_bcast[0]]
    in_specs = [
        pl.BlockSpec(memory_space=pltpu.MemorySpace.SMEM),
        pl.BlockSpec((1, c0, th0, w0), lambda bi, ti: (bi, 0, ti, 0)),
        pl.BlockSpec((c0, 1, w0), lambda bi, ti: (0, 0, 0)),
    ]
    for j in range(1, num_levels):
        xj = features_nchw[j]
        _, cj, hj, wj = xj.shape
        ah = jnp.asarray(bilinear_matrix(h0, hj))         # (H0, hj) -- row-sliced per tile
        awt = jnp.asarray(bilinear_matrix(w0, wj)).T      # (wj, W0)
        args += [xj, w_bcast[j], ah, awt]
        in_specs += [
            pl.BlockSpec((1, cj, hj, wj), lambda bi, ti: (bi, 0, 0, 0)),
            pl.BlockSpec((cj, 1, wj), lambda bi, ti: (0, 0, 0)),
            pl.BlockSpec((th0, hj), lambda bi, ti: (ti, 0)),
            pl.BlockSpec((wj, w0), lambda bi, ti: (0, 0)),
        ]

    out = pl.pallas_call(
        _make_eed_kernel(num_levels),
        grid=(n, h0 // th0),
        in_specs=in_specs,
        out_specs=pl.BlockSpec((1, th0, w0), lambda bi, ti: (bi, ti, 0)),
        out_shape=jax.ShapeDtypeStruct((n, h0, w0), jnp.float32),
        compiler_params=pltpu.CompilerParams(
            dimension_semantics=("parallel", "parallel")),
    )(*args)
    return out[:, None, :, :]                             # NCHW (N, 1, H0, W0)


# ----------------------------- pure-JAX reference -----------------------------

def eed_reference(features_nchw, params, num_fpn_layers):
    num_levels = len(features_nchw)
    ps = []
    for x, (wf, bf) in zip(features_nchw, params['lats']):
        xn = jnp.transpose(x, (0, 2, 3, 1)).astype(jnp.float32)
        ps.append(jnp.einsum('nhwc,cf->nhwf', xn, wf) + bf)
    ws = fast_normalize(params['eed_weights'], dim=1)
    fuses = [ws[0, j] * ps[j] for j in range(num_levels)]
    cur = ps
    for i in range(num_fpn_layers):
        cur = list(cur)  # identity BiFPN
        for j in range(num_levels):
            fuses[j] = fuses[j] + ws[i + 1, j] * cur[j]
    hw = fast_normalize(params['head_weight'])
    h0, w0 = fuses[0].shape[1:3]
    p = 0.0
    for j in range(num_levels):
        wc_row, bc = params['sides'][j]
        s = jnp.einsum('nhwc,kc->nhw', fuses[j], wc_row) + bc[0]
        ah = jnp.asarray(bilinear_matrix(h0, fuses[j].shape[1]))
        aw = jnp.asarray(bilinear_matrix(w0, fuses[j].shape[2]))
        z = jnp.einsum('Hh,nhw,Ww->nHW', ah, s, aw)
        p = p + hw[j] * z
    return p[:, None, :, :]


# ----------------------------------- main --------------------------------------

if __name__ == "__main__":
    key = jax.random.PRNGKey(0)
    k_feat, k_par = jax.random.split(key)

    # Small synthetic backbone outputs (p1, p2, p3, p5), NCHW like PyTorch.
    batch = 2
    in_channels_list = [4, 8, 16, 32]
    spatial = [16, 8, 4, 2]          # sides[0] is the largest (target) resolution
    f_channels = 32
    num_fpn_layers = 2

    fkeys = jax.random.split(k_feat, len(in_channels_list))
    features = [jax.random.normal(fk, (batch, c, s, s), jnp.float32)
                for fk, c, s in zip(fkeys, in_channels_list, spatial)]

    params = init_params(k_par, in_channels_list, f_channels, num_fpn_layers)

    out = jax.block_until_ready(eed_forward(features, params, num_fpn_layers))
    ref = jax.block_until_ready(eed_reference(features, params, num_fpn_layers))
    np.testing.assert_allclose(np.asarray(out), np.asarray(ref), rtol=1e-2, atol=1e-2)
    assert out.shape == (batch, 1, spatial[0], spatial[0])

    print("KERNEL_OK")
</pallas_src>

<mosaic_0001>
module attributes {stable_mosaic.version = 11 : i64} {
  func.func @kernel(%arg0: i32, %arg1: i32, %arg2: memref<4xf32, #tpu.memory_space<smem>>, %arg3: memref<1x4x16x16xf32, #tpu.memory_space<vmem>>, %arg4: memref<4x1x16xf32, #tpu.memory_space<vmem>>, %arg5: memref<1x8x8x8xf32, #tpu.memory_space<vmem>>, %arg6: memref<8x1x8xf32, #tpu.memory_space<vmem>>, %arg7: memref<16x8xf32, #tpu.memory_space<vmem>>, %arg8: memref<8x16xf32, #tpu.memory_space<vmem>>, %arg9: memref<1x16x4x4xf32, #tpu.memory_space<vmem>>, %arg10: memref<16x1x4xf32, #tpu.memory_space<vmem>>, %arg11: memref<16x4xf32, #tpu.memory_space<vmem>>, %arg12: memref<4x16xf32, #tpu.memory_space<vmem>>, %arg13: memref<1x32x2x2xf32, #tpu.memory_space<vmem>>, %arg14: memref<32x1x2xf32, #tpu.memory_space<vmem>>, %arg15: memref<16x2xf32, #tpu.memory_space<vmem>>, %arg16: memref<2x16xf32, #tpu.memory_space<vmem>>, %arg17: memref<1x16x16xf32, #tpu.memory_space<vmem>>) attributes {dimension_semantics = [#tpu.dimension_semantics<parallel>, #tpu.dimension_semantics<parallel>], iteration_bounds = array<i64: 2, 1>, scalar_prefetch = 0 : i64, scratch_operands = 0 : i64, tpu.core_type = #tpu.core_type<tc>, window_params = [{transform_indices = @transform_0, window_bounds = array<i64: 4>}, {transform_indices = @transform_1, window_bounds = array<i64: 1, 4, 16, 16>}, {pipeline_mode = #tpu.pipeline_mode<synchronous>, transform_indices = @transform_2, window_bounds = array<i64: 4, 1, 16>}, {transform_indices = @transform_3, window_bounds = array<i64: 1, 8, 8, 8>}, {pipeline_mode = #tpu.pipeline_mode<synchronous>, transform_indices = @transform_4, window_bounds = array<i64: 8, 1, 8>}, {transform_indices = @transform_5, window_bounds = array<i64: 16, 8>}, {pipeline_mode = #tpu.pipeline_mode<synchronous>, transform_indices = @transform_6, window_bounds = array<i64: 8, 16>}, {transform_indices = @transform_7, window_bounds = array<i64: 1, 16, 4, 4>}, {pipeline_mode = #tpu.pipeline_mode<synchronous>, transform_indices = @transform_8, window_bounds = array<i64: 16, 1, 4>}, {transform_indices = @transform_9, window_bounds = array<i64: 16, 4>}, {pipeline_mode = #tpu.pipeline_mode<synchronous>, transform_indices = @transform_10, window_bounds = array<i64: 4, 16>}, {transform_indices = @transform_11, window_bounds = array<i64: 1, 32, 2, 2>}, {pipeline_mode = #tpu.pipeline_mode<synchronous>, transform_indices = @transform_12, window_bounds = array<i64: 32, 1, 2>}, {transform_indices = @transform_13, window_bounds = array<i64: 16, 2>}, {pipeline_mode = #tpu.pipeline_mode<synchronous>, transform_indices = @transform_14, window_bounds = array<i64: 2, 16>}, {transform_indices = @transform_15, window_bounds = array<i64: 1, 16, 16>}]} {
    %c0 = arith.constant 0 : index
    %c0_0 = arith.constant 0 : index
    %c0_1 = arith.constant 0 : index
    %c0_2 = arith.constant 0 : index
    %0 = vector.load %arg3[%c0, %c0_0, %c0_1, %c0_2] : memref<1x4x16x16xf32, #tpu.memory_space<vmem>>, vector<1x4x16x16xf32>
    %1 = vector.shape_cast %0 : vector<1x4x16x16xf32> to vector<4x16x16xf32>
    %c0_3 = arith.constant 0 : index
    %c0_4 = arith.constant 0 : index
    %c0_5 = arith.constant 0 : index
    %2 = vector.load %arg4[%c0_3, %c0_4, %c0_5] : memref<4x1x16xf32, #tpu.memory_space<vmem>>, vector<4x1x16xf32>
    %3 = vector.broadcast %2 : vector<4x1x16xf32> to vector<4x16x16xf32>
    %4 = arith.mulf %1, %3 : vector<4x16x16xf32>
    %cst = arith.constant dense<0.000000e+00> : vector<16x16xf32>
    %5 = vector.multi_reduction <add>, %4, %cst [0] : vector<4x16x16xf32> to vector<16x16xf32>
    %c0_6 = arith.constant 0 : index
    %6 = memref.load %arg2[%c0_6] : memref<4xf32, #tpu.memory_space<smem>>
    %7 = vector.broadcast %6 : f32 to vector<16x16xf32>
    %8 = arith.addf %5, %7 : vector<16x16xf32>
    %c0_7 = arith.constant 0 : index
    %c0_8 = arith.constant 0 : index
    %c0_9 = arith.constant 0 : index
    %c0_10 = arith.constant 0 : index
    %9 = vector.load %arg5[%c0_7, %c0_8, %c0_9, %c0_10] : memref<1x8x8x8xf32, #tpu.memory_space<vmem>>, vector<1x8x8x8xf32>
    %10 = vector.shape_cast %9 : vector<1x8x8x8xf32> to vector<8x8x8xf32>
    %c0_11 = arith.constant 0 : index
    %c0_12 = arith.constant 0 : index
    %c0_13 = arith.constant 0 : index
    %11 = vector.load %arg6[%c0_11, %c0_12, %c0_13] : memref<8x1x8xf32, #tpu.memory_space<vmem>>, vector<8x1x8xf32>
    %12 = vector.broadcast %11 : vector<8x1x8xf32> to vector<8x8x8xf32>
    %13 = arith.mulf %10, %12 : vector<8x8x8xf32>
    %cst_14 = arith.constant dense<0.000000e+00> : vector<8x8xf32>
    %14 = vector.multi_reduction <add>, %13, %cst_14 [0] : vector<8x8x8xf32> to vector<8x8xf32>
    %c1 = arith.constant 1 : index
    %15 = memref.load %arg2[%c1] : memref<4xf32, #tpu.memory_space<smem>>
    %16 = vector.broadcast %15 : f32 to vector<8x8xf32>
    %17 = arith.addf %14, %16 : vector<8x8xf32>
    %c0_15 = arith.constant 0 : index
    %c0_16 = arith.constant 0 : index
    %18 = vector.load %arg8[%c0_15, %c0_16] : memref<8x16xf32, #tpu.memory_space<vmem>>, vector<8x16xf32>
    %cst_17 = arith.constant dense<0.000000e+00> : vector<8x16xf32>
    %19 = tpu.matmul %17, %18, %cst_17 {dimension_numbers = #tpu.dot_dimension_numbers<[1], [0], [0], [1], [0, 0, 1, 1], [], []>} : vector<8x8xf32>, vector<8x16xf32>, vector<8x16xf32> -> vector<8x16xf32>
    %c0_18 = arith.constant 0 : index
    %c0_19 = arith.constant 0 : index
    %20 = vector.load %arg7[%c0_18, %c0_19] : memref<16x8xf32, #tpu.memory_space<vmem>>, vector<16x8xf32>
    %cst_20 = arith.constant dense<0.000000e+00> : vector<16x16xf32>
    %21 = tpu.matmul %20, %19, %cst_20 {dimension_numbers = #tpu.dot_dimension_numbers<[1], [0], [0], [1], [0, 0, 1, 1], [], []>} : vector<16x8xf32>, vector<8x16xf32>, vector<16x16xf32> -> vector<16x16xf32>
    %22 = arith.addf %8, %21 : vector<16x16xf32>
    %c0_21 = arith.constant 0 : index
    %c0_22 = arith.constant 0 : index
    %c0_23 = arith.constant 0 : index
    %c0_24 = arith.constant 0 : index
    %23 = vector.load %arg9[%c0_21, %c0_22, %c0_23, %c0_24] : memref<1x16x4x4xf32, #tpu.memory_space<vmem>>, vector<1x16x4x4xf32>
    %24 = vector.shape_cast %23 : vector<1x16x4x4xf32> to vector<16x4x4xf32>
    %c0_25 = arith.constant 0 : index
    %c0_26 = arith.constant 0 : index
    %c0_27 = arith.constant 0 : index
    %25 = vector.load %arg10[%c0_25, %c0_26, %c0_27] : memref<16x1x4xf32, #tpu.memory_space<vmem>>, vector<16x1x4xf32>
    %26 = vector.broadcast %25 : vector<16x1x4xf32> to vector<16x4x4xf32>
    %27 = arith.mulf %24, %26 : vector<16x4x4xf32>
    %cst_28 = arith.constant dense<0.000000e+00> : vector<4x4xf32>
    %28 = vector.multi_reduction <add>, %27, %cst_28 [0] : vector<16x4x4xf32> to vector<4x4xf32>
    %c2 = arith.constant 2 : index
    %29 = memref.load %arg2[%c2] : memref<4xf32, #tpu.memory_space<smem>>
    %30 = vector.broadcast %29 : f32 to vector<4x4xf32>
    %31 = arith.addf %28, %30 : vector<4x4xf32>
    %c0_29 = arith.constant 0 : index
    %c0_30 = arith.constant 0 : index
    %32 = vector.load %arg12[%c0_29, %c0_30] : memref<4x16xf32, #tpu.memory_space<vmem>>, vector<4x16xf32>
    %cst_31 = arith.constant dense<0.000000e+00> : vector<4x16xf32>
    %33 = tpu.matmul %31, %32, %cst_31 {dimension_numbers = #tpu.dot_dimension_numbers<[1], [0], [0], [1], [0, 0, 1, 1], [], []>} : vector<4x4xf32>, vector<4x16xf32>, vector<4x16xf32> -> vector<4x16xf32>
    %c0_32 = arith.constant 0 : index
    %c0_33 = arith.constant 0 : index
    %34 = vector.load %arg11[%c0_32, %c0_33] : memref<16x4xf32, #tpu.memory_space<vmem>>, vector<16x4xf32>
    %cst_34 = arith.constant dense<0.000000e+00> : vector<16x16xf32>
    %35 = tpu.matmul %34, %33, %cst_34 {dimension_numbers = #tpu.dot_dimension_numbers<[1], [0], [0], [1], [0, 0, 1, 1], [], []>} : vector<16x4xf32>, vector<4x16xf32>, vector<16x16xf32> -> vector<16x16xf32>
    %36 = arith.addf %22, %35 : vector<16x16xf32>
    %c0_35 = arith.constant 0 : index
    %c0_36 = arith.constant 0 : index
    %c0_37 = arith.constant 0 : index
    %c0_38 = arith.constant 0 : index
    %37 = vector.load %arg13[%c0_35, %c0_36, %c0_37, %c0_38] : memref<1x32x2x2xf32, #tpu.memory_space<vmem>>, vector<1x32x2x2xf32>
    %38 = vector.shape_cast %37 : vector<1x32x2x2xf32> to vector<32x2x2xf32>
    %c0_39 = arith.constant 0 : index
    %c0_40 = arith.constant 0 : index
    %c0_41 = arith.constant 0 : index
    %39 = vector.load %arg14[%c0_39, %c0_40, %c0_41] : memref<32x1x2xf32, #tpu.memory_space<vmem>>, vector<32x1x2xf32>
    %40 = vector.broadcast %39 : vector<32x1x2xf32> to vector<32x2x2xf32>
    %41 = arith.mulf %38, %40 : vector<32x2x2xf32>
    %cst_42 = arith.constant dense<0.000000e+00> : vector<2x2xf32>
    %42 = vector.multi_reduction <add>, %41, %cst_42 [0] : vector<32x2x2xf32> to vector<2x2xf32>
    %c3 = arith.constant 3 : index
    %43 = memref.load %arg2[%c3] : memref<4xf32, #tpu.memory_space<smem>>
    %44 = vector.broadcast %43 : f32 to vector<2x2xf32>
    %45 = arith.addf %42, %44 : vector<2x2xf32>
    %c0_43 = arith.constant 0 : index
    %c0_44 = arith.constant 0 : index
    %46 = vector.load %arg16[%c0_43, %c0_44] : memref<2x16xf32, #tpu.memory_space<vmem>>, vector<2x16xf32>
    %cst_45 = arith.constant dense<0.000000e+00> : vector<2x16xf32>
    %47 = tpu.matmul %45, %46, %cst_45 {dimension_numbers = #tpu.dot_dimension_numbers<[1], [0], [0], [1], [0, 0, 1, 1], [], []>} : vector<2x2xf32>, vector<2x16xf32>, vector<2x16xf32> -> vector<2x16xf32>
    %c0_46 = arith.constant 0 : index
    %c0_47 = arith.constant 0 : index
    %48 = vector.load %arg15[%c0_46, %c0_47] : memref<16x2xf32, #tpu.memory_space<vmem>>, vector<16x2xf32>
    %cst_48 = arith.constant dense<0.000000e+00> : vector<16x16xf32>
    %49 = tpu.matmul %48, %47, %cst_48 {dimension_numbers = #tpu.dot_dimension_numbers<[1], [0], [0], [1], [0, 0, 1, 1], [], []>} : vector<16x2xf32>, vector<2x16xf32>, vector<16x16xf32> -> vector<16x16xf32>
    %50 = arith.addf %36, %49 : vector<16x16xf32>
    %c0_49 = arith.constant 0 : index
    %c0_50 = arith.constant 0 : index
    %c0_51 = arith.constant 0 : index
    %51 = vector.load %arg17[%c0_49, %c0_50, %c0_51] : memref<1x16x16xf32, #tpu.memory_space<vmem>>, vector<1x16x16xf32>
    %52 = vector.shape_cast %51 : vector<1x16x16xf32> to vector<16x16xf32>
    %53 = vector.shape_cast %50 : vector<16x16xf32> to vector<1x16x16xf32>
    tpu.vector_store %arg17[%c0_49, %c0_50, %c0_51], %53 {strides = array<i32>} : memref<1x16x16xf32, #tpu.memory_space<vmem>>, vector<1x16x16xf32>,
    return
  }
  func.func @transform_0(%arg0: i32, %arg1: i32) -> i32 {
    %c0_i32 = arith.constant 0 : i32
    %c0_i32_0 = arith.constant 0 : i32
    return %c0_i32 : i32
  }
  func.func @transform_1(%arg0: i32, %arg1: i32) -> (i32, i32, i32, i32) {
    %c0_i32 = arith.constant 0 : i32
    %c0_i32_0 = arith.constant 0 : i32
    %c0_i32_1 = arith.constant 0 : i32
    return %arg0, %c0_i32, %arg1, %c0_i32_0 : i32, i32, i32, i32
  }
  func.func @transform_2(%arg0: i32, %arg1: i32) -> (i32, i32, i32) {
    %c0_i32 = arith.constant 0 : i32
    %c0_i32_0 = arith.constant 0 : i32
    %c0_i32_1 = arith.constant 0 : i32
    %c0_i32_2 = arith.constant 0 : i32
    return %c0_i32, %c0_i32_0, %c0_i32_1 : i32, i32, i32
  }
  func.func @transform_3(%arg0: i32, %arg1: i32) -> (i32, i32, i32, i32) {
    %c0_i32 = arith.constant 0 : i32
    %c0_i32_0 = arith.constant 0 : i32
    %c0_i32_1 = arith.constant 0 : i32
    %c0_i32_2 = arith.constant 0 : i32
    return %arg0, %c0_i32, %c0_i32_0, %c0_i32_1 : i32, i32, i32, i32
  }
  func.func @transform_4(%arg0: i32, %arg1: i32) -> (i32, i32, i32) {
    %c0_i32 = arith.constant 0 : i32
    %c0_i32_0 = arith.constant 0 : i32
    %c0_i32_1 = arith.constant 0 : i32
    %c0_i32_2 = arith.constant 0 : i32
    return %c0_i32, %c0_i32_0, %c0_i32_1 : i32, i32, i32
  }
  func.func @transform_5(%arg0: i32, %arg1: i32) -> (i32, i32) {
    %c0_i32 = arith.constant 0 : i32
    %c0_i32_0 = arith.constant 0 : i32
    return %arg1, %c0_i32 : i32, i32
  }
  func.func @transform_6(%arg0: i32, %arg1: i32) -> (i32, i32) {
    %c0_i32 = arith.constant 0 : i32
    %c0_i32_0 = arith.constant 0 : i32
    %c0_i32_1 = arith.constant 0 : i32
    return %c0_i32, %c0_i32_0 : i32, i32
  }
  func.func @transform_7(%arg0: i32, %arg1: i32) -> (i32, i32, i32, i32) {
    %c0_i32 = arith.constant 0 : i32
    %c0_i32_0 = arith.constant 0 : i32
    %c0_i32_1 = arith.constant 0 : i32
    %c0_i32_2 = arith.constant 0 : i32
    return %arg0, %c0_i32, %c0_i32_0, %c0_i32_1 : i32, i32, i32, i32
  }
  func.func @transform_8(%arg0: i32, %arg1: i32) -> (i32, i32, i32) {
    %c0_i32 = arith.constant 0 : i32
    %c0_i32_0 = arith.constant 0 : i32
    %c0_i32_1 = arith.constant 0 : i32
    %c0_i32_2 = arith.constant 0 : i32
    return %c0_i32, %c0_i32_0, %c0_i32_1 : i32, i32, i32
  }
  func.func @transform_9(%arg0: i32, %arg1: i32) -> (i32, i32) {
    %c0_i32 = arith.constant 0 : i32
    %c0_i32_0 = arith.constant 0 : i32
    return %arg1, %c0_i32 : i32, i32
  }
  func.func @transform_10(%arg0: i32, %arg1: i32) -> (i32, i32) {
    %c0_i32 = arith.constant 0 : i32
    %c0_i32_0 = arith.constant 0 : i32
    %c0_i32_1 = arith.constant 0 : i32
    return %c0_i32, %c0_i32_0 : i32, i32
  }
  func.func @transform_11(%arg0: i32, %arg1: i32) -> (i32, i32, i32, i32) {
    %c0_i32 = arith.constant 0 : i32
    %c0_i32_0 = arith.constant 0 : i32
    %c0_i32_1 = arith.constant 0 : i32
    %c0_i32_2 = arith.constant 0 : i32
    return %arg0, %c0_i32, %c0_i32_0, %c0_i32_1 : i32, i32, i32, i32
  }
  func.func @transform_12(%arg0: i32, %arg1: i32) -> (i32, i32, i32) {
    %c0_i32 = arith.constant 0 : i32
    %c0_i32_0 = arith.constant 0 : i32
    %c0_i32_1 = arith.constant 0 : i32
    %c0_i32_2 = arith.constant 0 : i32
    return %c0_i32, %c0_i32_0, %c0_i32_1 : i32, i32, i32
  }
  func.func @transform_13(%arg0: i32, %arg1: i32) -> (i32, i32) {
    %c0_i32 = arith.constant 0 : i32
    %c0_i32_0 = arith.constant 0 : i32
    return %arg1, %c0_i32 : i32, i32
  }
  func.func @transform_14(%arg0: i32, %arg1: i32) -> (i32, i32) {
    %c0_i32 = arith.constant 0 : i32
    %c0_i32_0 = arith.constant 0 : i32
    %c0_i32_1 = arith.constant 0 : i32
    return %c0_i32, %c0_i32_0 : i32, i32
  }
  func.func @transform_15(%arg0: i32, %arg1: i32) -> (i32, i32, i32) {
    %c0_i32 = arith.constant 0 : i32
    %c0_i32_0 = arith.constant 0 : i32
    return %arg0, %arg1, %c0_i32 : i32, i32, i32
  }
}

</mosaic_0001>

<bundles_post_ra>
// kernel: tpu_custom_call.1
= control target key start
LH: loop header
LB: loop body
LE: loop exit
PB: predicated region body
PF: predicated region fallthrough
CT: control target
= control target key end

     0   :  { %s2952_s0 = inlined_call_operand.vmem [shape: f32[4], index: 0, kind: input, shape index: {}]   ;;  %s2953_s1 = inlined_call_operand.vmem [shape: f32[2,4,16,16], index: 1, kind: input, shape index: {}]   ;;  %s2954_s2 = inlined_call_operand.vmem [shape: f32[4,1,16], index: 2, kind: input, shape index: {}]   ;;  %s2955_s3 = inlined_call_operand.vmem [shape: f32[2,8,8,8], index: 3, kind: input, shape index: {}]   ;;  %s2956_s4 = inlined_call_operand.vmem [shape: f32[8,1,8], index: 4, kind: input, shape index: {}]   ;;  %s2957_s5 = inlined_call_operand.vmem [shape: f32[16,8], index: 5, kind: input, shape index: {}]   ;;  %s2958_s6 = inlined_call_operand.vmem [shape: f32[8,16], index: 6, kind: input, shape index: {}]   ;;  %s2959_s7 = inlined_call_operand.vmem [shape: f32[2,16,4,4], index: 7, kind: input, shape index: {}]   ;;  %s2960_s8 = inlined_call_operand.vmem [shape: f32[16,1,4], index: 8, kind: input, shape index: {}]   ;;  %s2961_s9 = inlined_call_operand.vmem [shape: f32[16,4], index: 9, kind: input, shape index: {}]   ;;  %s2962_s10 = inlined_call_operand.vmem [shape: f32[4,16], index: 10, kind: input, shape index: {}]   ;;  %s2963_s11 = inlined_call_operand.vmem [shape: f32[2,32,2,2], index: 11, kind: input, shape index: {}]   ;;  %s2964_s12 = inlined_call_operand.vmem [shape: f32[32,1,2], index: 12, kind: input, shape index: {}]   ;;  %s2965_s13 = inlined_call_operand.vmem [shape: f32[16,2], index: 13, kind: input, shape index: {}]   ;;  %s2966_s14 = inlined_call_operand.vmem [shape: f32[2,16], index: 14, kind: input, shape index: {}]   ;;  %s2967_s15 = inlined_call_operand.hbm [shape: f32[2,16,16], index: 15, kind: output, shape index: {}]  }
   0x1   :  { %2972 = sst [smem:[#allocation13_spill]] %s2952_s0 }
   0x2   :  { %2973 = sst [smem:[#allocation14_spill]] %s2958_s6 }
   0x3   :  { %20 = vsyncpa [#allocation4], 0 }
   0x4   :  { %21 = vsyncpa [#allocation3], 0 }
   0x5   :  { %23 = vsyncpa [#allocation3 + $0x1], 0  ;;  %s2446_s18 = smov 0   ;;  %s2448_s19 = smov 0  }
   0x6   :  { %s2450_s20 = smov 0   ;;  %s2452_s21 = smov 0  }
   0x7   :  { %s2454_s22 = smov 0   ;;  %s2456_s23 = smov 0  }
   0x8 LB: > { %2974 = sst [smem:[#allocation8_spill]] %s2338_s18  ;;  %s2035_s24 = sadd.s32 4294967295, %s2358_s23   ;;  %s2358_s23 = sphi %s2456_s23, %s29_s23   ;;  %s2354_s22 = sphi %s2454_s22, %s2989_s22   ;;  %s2350_s21 = sphi %s2452_s21, %s2988_s21   ;;  %s2346_s20 = sphi %s2450_s20, %s2987_s20   ;;  %s2342_s19 = sphi %s2448_s19, %s2991_s19   ;;  %s2338_s18 = sphi %s2446_s18, %s2990_s18  }
   0x9   : > { %2975 = sst [smem:[#allocation9_spill]] %s2346_s20  ;;  %s2036_s25 = sadd.s32 4294967294, %s2358_s23  }
   0xa   : > { %2976 = sst [smem:[#allocation10_spill]] %s2354_s22  ;;  %s41_s26 = sadd.s32 1, %s2354_s22 }
   0xb   : > { %s402_s27 = sadd.s32 1, %s2346_s20  ;;  %p43_p0 = scmp.ge.s32.totalorder %s41_s26, 2 }
   0xc   : > { %p412_p1 = scmp.ne.s32.totalorder %s2346_s20, %s2342_s19  ;;  %p413_p2 = scmp.eq.s32.totalorder %s2035_s24, 1 }
   0xd   : > { %p418_p3 = scmp.ne.s32.totalorder %s2342_s19, %s2338_s18  ;;  %s2993_s26 = smov (%p43_p0, %s41_s26), 0 }
   0xe   : > { %2977 = sst [smem:[#allocation11_spill]] %s2993_s26  ;;  %p2486_p4 = por %p413_p2, %p412_p1 }
   0xf   : > { %p419_p5 = scmp.eq.s32.totalorder %s2036_s25, 1  ;;  %s397_s29 = ssub.s32 %s2354_s22, %s2993_s26 }
  0x10   : > { %p2037_p6 = scmp.ge.s32.totalorder %s2358_s23, 1  ;;  %p400_p7 = scmp.eq.s32.totalorder %s397_s29, 0 }
  0x11   : > { %p2493_p8 = por %p419_p5, %p418_p3  ;;  %p426_p9 = scmp.lt.s32.totalorder %s2358_s23, 3 }
  0x12   : > { %s2499_s16 = scalar_select %p400_p7, %s2346_s20, %s402_s27  }
  0x13   : > { %p2501_p10 = pnand %p2037_p6, %p426_p9  ;;  %p2505_p11 = scmp.eq.s32.totalorder %s2035_s24, 0 }
  0x14   : > { %2980 = sst [smem:[#allocation12_spill]] %s2499_s16  ;;  %s2983_s0 = sld [smem:[#allocation13_spill]] }
  0x15   : > { %p2197_p12 = pneg %p2501_p10 }
  0x17   : > { %p2198_p13 = pnand %p2505_p11, %p2197_p12 }
  0x19   : > { %p2263_p1 = pneg %p2198_p13 }
  0x1a   : > { %s439_s29 = sshll.u32 %s2983_s0, 4  ;;  %s440_s29 = int_to_ptr.vmem [resolvable:$true] %s439_s29 }
  0x1b   : > { %s2261_s27 = scalar_lea.vmem %s440_s29, 16  ;;  %p2269_p5 = scmp.lt.s32.totalorder %s440_s29, %s440_s29 }
  0x1c   : > { %p2262_p0 = scmp.ne.s32.totalorder %s440_s29, %s2261_s27  ;;  %p2270_p6 = scmp.lt.s32.totalorder %s2261_s27, %s2261_s27 }
  0x1e   : > { %p2264_p2 = pnand %p2263_p1, %p2262_p0  ;;  %p2271_p7 = por %p2270_p6, %p2269_p5 }
  0x20   : > { %p2265_p3 = pneg %p2264_p2 }
  0x22   : > { %p2272_p9 = pnand %p2271_p7, %p2265_p3 }
  0x24   : > { %2275 = shalt.err (!%p2272_p9)
}
  0x25   : > { %s2360_s24 = smov [#allocation2]   ;;  %537 = sbr.rel (%p2501_p10) target bundleno = 591 (0x24f), region = 80 }
  0x26   : > { %2200 = dma.vmem_to_smem (!%p2198_p13), %s440_s29, 16, %s2360_s24, [#allocation4]  }
  0x2c   : > { %2329 = dma.done.wait (%p2505_p11), [#allocation4], 16  }
  0x2d   : > { %2331 = vsyncadd (%p2505_p11), [#allocation4], 4294967280 }
  0x2e   : > { %543 = sfence }
  0x2f   : > { %s2984_s6 = sld [smem:[#allocation14_spill]]  ;;  %p621_p12 = scmp.lt.s32.totalorder %s2350_s21, 1  ;;  %v2361_v1 = vmov 0.0   ;;  %vm2362_vm0 = vmmov 0   ;;  %v2058_v2 = vld [vmem:[%s2956_s4] ss:$0 sm:$0xff] }
  0x30   : > { %2155 = vmatprep.subr.mxu0 %v2361_v1  ;;  %2157 = vmatprep.mubr.msk.f32.mxu0 %vm2362_vm0, %v2361_v1  ;;  %v2059_v3 = vld [vmem:[%s2956_s4 + $0x1] ss:$0 sm:$0xff]  ;;  %v2060_v4 = vld [vmem:[%s2956_s4 + $0x2] ss:$0 sm:$0xff]  ;;  %v2061_v5 = vld [vmem:[%s2956_s4 + $0x3] ss:$0 sm:$0xff] }
  0x31   : > { %s622_s17 = scalar_select %p621_p12, %s2350_s21, 1  ;;  %v2062_v6 = vld [vmem:[%s2956_s4 + $0x4] ss:$0 sm:$0xff]  ;;  %vm799_vm1 = vcmask 64512   ;;  %v2063_v16 = vld [vmem:[%s2956_s4 + $0x5] ss:$0 sm:$0xff] }
  0x32   : > { %v2064_v22 = vld [vmem:[%s2956_s4 + $0x6] ss:$0 sm:$0xff]  ;;  %v2065_v25 = vld [vmem:[%s2956_s4 + $0x7] ss:$0 sm:$0xff]  ;;  %v2070_v31 = vld [vmem:[%s2960_s8] ss:$0 sm:$0xff] }
  0x33   : > { %s2534_s27 = sshll.u32 %s622_s17, 6  ;;  %s2571_s17 = sld [smem:[#allocation2 + $0x1]]  ;;  %v2071_v35 = vld [vmem:[%s2960_s8 + $0x1] ss:$0 sm:$0xff]  ;;  %v2072_v38 = vld [vmem:[%s2960_s8 + $0x2] ss:$0 sm:$0xff] }
  0x34   : > { %s634_s16 = scalar_lea.vmem %s2955_s3, %s2534_s27  ;;  %s2559_s20 = scalar_lea.vmem %s2959_s7, %s2534_s27  ;;  %v2073_v42 = vld [vmem:[%s2960_s8 + $0x3] ss:$0 sm:$0xff]  ;;  %vm1121_vm2 = vcmask 27648   ;;  %v2074_v48 = vld [vmem:[%s2960_s8 + $0x4] ss:$0 sm:$0xff]  ;;  %vm1161_vm3 = vcmask 1043456  }
  0x35   : > { %v818_v0 = vld [vmem:[%s2984_s6] sm:$0xff]  ;;  %v728_v8 = vld [vmem:[%s634_s16 + $0x8] sm:$0xff]  ;;  %v729_v9 = vld [vmem:[%s634_s16 + $0x10] sm:$0xff]  ;;  %s2652_s6 = scalar_lea.vmem %s2963_s11, %s2534_s27  ;;  %s2659_s26 = sld [smem:[#allocation2 + $0x2]]  ;;  %vm1611_vm4 = vcmask 9216   ;;  %vm1157_vm5 = vcmask 31744  }
  0x36   : > { %2156 = vmatpush3.msra.mxu0 %v818_v0  ;;  %v727_v7 = vld [vmem:[%s634_s16] sm:$0xff]  ;;  %v730_v10 = vld [vmem:[%s634_s16 + $0x18] sm:$0xff]  ;;  %v792_v13 = vmul.f32 %v2059_v3, %v728_v8  ;;  %v793_v14 = vmul.f32 %v2060_v4, %v729_v9  ;;  %v732_v15 = vld [vmem:[%s634_s16 + $0x28] sm:$0xff]  ;;  %vm1683_vm6 = vcmask 1041408   ;;  %vm1679_vm7 = vcmask 15360   ;;  %s2139_s0 = sshll.u32 %s2350_s21, 8 }
  0x37   : > { %2165 = vmatprep.subr.mxu0 %v2361_v1  ;;  %v731_v11 = vld [vmem:[%s634_s16 + $0x20] sm:$0xff]  ;;  %v791_v12 = vmul.f32 %v2058_v2, %v727_v7  ;;  %v794_v17 = vmul.f32 %v2061_v5, %v730_v10  ;;  %v733_v21 = vld [vmem:[%s634_s16 + $0x30] sm:$0xff]  ;;  %v796_v26 = vmul.f32 %v2063_v16, %v732_v15  ;;  %v734_v28 = vld [vmem:[%s634_s16 + $0x38] sm:$0xff]  ;;  %vm708_vm8 = vcmask 130048   ;;  %s2902_s25 = scalar_lea.hbm %s2967_s15, %s2139_s0 }
  0x38   : > { %v795_v18 = vmul.f32 %v2062_v6, %v731_v11  ;;  %v801_v20 = vsel %vm799_vm1, %v792_v13, 0.0  ;;  %v803_v24 = vsel %vm799_vm1, %v793_v14, 0.0  ;;  %v977_v30 = vld [vmem:[%s2559_s20] sm:$0xf]  ;;  %v797_v32 = vmul.f32 %v2064_v22, %v733_v21  ;;  %v978_v34 = vld [vmem:[%s2559_s20 + $0x4] sm:$0xf] }
  0x39   : > { %v800_v19 = vsel %vm799_vm1, %v791_v12, 0.0  ;;  %v805_v27 = vsel %vm799_vm1, %v794_v17, 0.0  ;;  %v979_v37 = vld [vmem:[%s2559_s20 + $0x8] sm:$0xf]  ;;  %v798_v39 = vmul.f32 %v2065_v25, %v734_v28  ;;  %v809_v40 = vsel %vm799_vm1, %v796_v26, 0.0 }
  0x3a   : > { %v802_v23 = vadd.f32 %v801_v20, %v800_v19  ;;  %v807_v33 = vsel %vm799_vm1, %v795_v18, 0.0  ;;  %v980_v41 = vld [vmem:[%s2559_s20 + $0xc] sm:$0xf]  ;;  %v1105_v43 = vmul.f32 %v2070_v31, %v977_v30  ;;  %v1106_v45 = vmul.f32 %v2071_v35, %v978_v34  ;;  %v981_v47 = vld [vmem:[%s2559_s20 + $0x10] sm:$0xf] }
  0x3b   : > { %v811_v46 = vsel %vm799_vm1, %v797_v32, 0.0  ;;  %v1107_v49 = vmul.f32 %v2072_v38, %v979_v37  ;;  %v1108_v51 = vmul.f32 %v2073_v42, %v980_v41  ;;  %v813_v52 = vsel %vm799_vm1, %v798_v39, 0.0  ;;  %v982_v53 = vld [vmem:[%s2559_s20 + $0x14] sm:$0xf]  ;;  %v2075_v54 = vld [vmem:[%s2960_s8 + $0x5] ss:$0 sm:$0xff] }
  0x3c   : > { %v804_v29 = vadd.f32 %v803_v24, %v802_v23  ;;  %v1122_v55 = vsel %vm1121_vm2, %v1105_v43, 0.0  ;;  %v1109_v57 = vmul.f32 %v2074_v48, %v981_v47  ;;  %v1123_v58 = vsel %vm1121_vm2, %v1106_v45, 0.0  ;;  %v983_v60 = vld [vmem:[%s2559_s20 + $0x18] sm:$0xf]  ;;  %v2076_v61 = vld [vmem:[%s2960_s8 + $0x6] ss:$0 sm:$0xff] }
  0x3d   : > { %v816_v59 = vstv %s2571_s17  ;;  %v1124_v62 = vadd.f32 %v1123_v58, %v1122_v55  ;;  %v1125_v63 = vsel %vm1121_vm2, %v1107_v49, 0.0  ;;  %v1110_v2 = vmul.f32 %v2075_v54, %v982_v53  ;;  %v984_v4 = vld [vmem:[%s2559_s20 + $0x1c] sm:$0xf]  ;;  %v2077_v5 = vld [vmem:[%s2960_s8 + $0x7] ss:$0 sm:$0xff]  ;;  %s617_s17 = sand.u32 1, %s2342_s19  }
  0x3e   : > { %v806_v36 = vadd.f32 %v805_v27, %v804_v29  ;;  %v1127_v3 = vsel %vm1121_vm2, %v1108_v51, 0.0  ;;  %v1156_v8 = vld [vmem:[%s2962_s10] sm:$0xf]  ;;  %v1111_v9 = vmul.f32 %v2076_v61, %v983_v60  ;;  %v1129_v10 = vsel %vm1121_vm2, %v1109_v57, 0.0  ;;  %v2078_v12 = vld [vmem:[%s2960_s8 + $0x8] ss:$0 sm:$0xff] }
  0x3f   : > { %v1126_v6 = vadd.f32 %v1125_v63, %v1124_v62  ;;  %v985_v11 = vld [vmem:[%s2559_s20 + $0x20] sm:$0xf]  ;;  %v1112_v14 = vmul.f32 %v2077_v5, %v984_v4  ;;  %v1131_v15 = vsel %vm1121_vm2, %v1110_v2, 0.0  ;;  %v986_v16 = vld [vmem:[%s2559_s20 + $0x24] sm:$0xf]  ;;  %s2045_s29 = sshll.u32 %s617_s17, 4 }
  0x40   : > { %v808_v44 = vadd.f32 %v807_v33, %v806_v36  ;;  %v2079_v17 = vld [vmem:[%s2960_s8 + $0x9] ss:$0 sm:$0xff]  ;;  %v1113_v19 = vmul.f32 %v2078_v12, %v985_v11  ;;  %v1133_v20 = vsel %vm1121_vm2, %v1111_v9, 0.0  ;;  %v2080_v22 = vld [vmem:[%s2960_s8 + $0xa] ss:$0 sm:$0xff]  ;;  %s2906_s16 = scalar_lea.sflag [#allocation3], %s617_s17 }
  0x41   : > { %v1128_v13 = vadd.f32 %v1127_v3, %v1126_v6  ;;  %v987_v21 = vld [vmem:[%s2559_s20 + $0x28] sm:$0xf]  ;;  %v1114_v24 = vmul.f32 %v2079_v17, %v986_v16  ;;  %v1135_v25 = vsel %vm1121_vm2, %v1112_v14, 0.0  ;;  %v988_v26 = vld [vmem:[%s2559_s20 + $0x2c] sm:$0xf]  ;;  %v1154_v16 = vstv %s2659_s26  ;;  %s2124_s26 = sld [smem:[#allocation2 + $0x3]] }
  0x42   : > { %v810_v50 = vadd.f32 %v809_v40, %v808_v44  ;;  %v2081_v27 = vld [vmem:[%s2960_s8 + $0xb] ss:$0 sm:$0xff]  ;;  %v989_v29 = vld [vmem:[%s2559_s20 + $0x30] sm:$0xf]  ;;  %v2082_v30 = vld [vmem:[%s2960_s8 + $0xc] ss:$0 sm:$0xff]  ;;  %v1115_v31 = vmul.f32 %v2080_v22, %v987_v21 }
  0x43   : > { %v1130_v18 = vadd.f32 %v1129_v10, %v1128_v13  ;;  %v1137_v32 = vsel %vm1121_vm2, %v1113_v19, 0.0  ;;  %v1116_v34 = vmul.f32 %v2081_v27, %v988_v26  ;;  %v1139_v35 = vsel %vm1121_vm2, %v1114_v24, 0.0  ;;  %v990_v36 = vld [vmem:[%s2559_s20 + $0x34] sm:$0xf]  ;;  %v2083_v37 = vld [vmem:[%s2960_s8 + $0xd] ss:$0 sm:$0xff] }
  0x44   : > { %v812_v56 = vadd.f32 %v811_v46, %v810_v50  ;;  %v1117_v38 = vmul.f32 %v2082_v30, %v989_v29  ;;  %v1141_v40 = vsel %vm1121_vm2, %v1115_v31, 0.0  ;;  %v991_v41 = vld [vmem:[%s2559_s20 + $0x38] sm:$0xf]  ;;  %v992_v42 = vld [vmem:[%s2559_s20 + $0x3c] sm:$0xf]  ;;  %v1118_v46 = vmul.f32 %v2083_v37, %v990_v36  ;;  %s628_s20 = scalar_lea.vmem %s2953_s1, %s2534_s27  ;;  %s2363_s27 = smov [#allocation5]  }
  0x45   : > { %v1132_v23 = vadd.f32 %v1131_v15, %v1130_v18  ;;  %v2084_v43 = vld [vmem:[%s2960_s8 + $0xe] ss:$0 sm:$0xff]  ;;  %v2085_v45 = vld [vmem:[%s2960_s8 + $0xf] ss:$0 sm:$0xff]  ;;  %v1143_v47 = vsel %vm1121_vm2, %v1116_v34, 0.0 }
  0x46   : > { %v814_v0 = vadd.f32 %v813_v52, %v812_v56  ;;  %v1323_v48 = vld [vmem:[%s2652_s6] sm:$0x3]  ;;  %v1145_v50 = vsel %vm1121_vm2, %v1117_v38, 0.0  ;;  %v1324_v51 = vld [vmem:[%s2652_s6 + $0x2] sm:$0x3]  ;;  %v1119_v53 = vmul.f32 %v2084_v43, %v991_v41  ;;  %v1120_v58 = vmul.f32 %v2085_v45, %v992_v42 }
  0x47   : > { %v1134_v28 = vadd.f32 %v1133_v20, %v1132_v23  ;;  %v1325_v52 = vld [vmem:[%s2652_s6 + $0x4] sm:$0x3]  ;;  %v2092_v54 = vld [vmem:[%s2964_s12] ss:$0 sm:$0xff]  ;;  %v2093_v55 = vld [vmem:[%s2964_s12 + $0x1] ss:$0 sm:$0xff] }
  0x48   : > { %v817_v7 = vadd.f32 %v816_v59, %v814_v0  ;;  %v2094_v56 = vld [vmem:[%s2964_s12 + $0x2] ss:$0 sm:$0xff]  ;;  %v1147_v59 = vsel %vm1121_vm2, %v1118_v46, 0.0  ;;  %v1326_v60 = vld [vmem:[%s2652_s6 + $0x6] sm:$0x3]  ;;  %v1579_v2 = vmul.f32 %v2092_v54, %v1323_v48  ;;  %v1580_v3 = vmul.f32 %v2093_v55, %v1324_v51 }
  0x49   : > { %v1136_v33 = vadd.f32 %v1135_v25, %v1134_v28  ;;  %v2095_v61 = vld [vmem:[%s2964_s12 + $0x3] ss:$0 sm:$0xff]  ;;  %v1327_v63 = vld [vmem:[%s2652_s6 + $0x8] sm:$0x3]  ;;  %v2096_v0 = vld [vmem:[%s2964_s12 + $0x4] ss:$0 sm:$0xff]  ;;  %v1581_v4 = vmul.f32 %v2094_v56, %v1325_v52 }
  0x4a   : > { %2158 = vmatmul.mubr.msk.f32.vlgmr.msra.gmra.mrb[0].mxu0 %vm799_vm1, %v817_v7  ;;  %v1149_v5 = vsel %vm1121_vm2, %v1119_v53, 0.0  ;;  %v1582_v7 = vmul.f32 %v2095_v61, %v1326_v60  ;;  %v1328_v9 = vld [vmem:[%s2652_s6 + $0xa] sm:$0x3]  ;;  %v2097_v10 = vld [vmem:[%s2964_s12 + $0x5] ss:$0 sm:$0xff]  ;;  %v1583_v11 = vmul.f32 %v2096_v0, %v1327_v63  ;;  %v1612_v13 = vsel %vm1611_vm4, %v1579_v2, 0.0 }
  0x4b   : > { %2166 = vmatpush3.msk.msra.mxu0 %vm1161_vm3, %v1156_v8  ;;  %2167 = vmatprep.mubr.msk.f32.mxu0 %vm2362_vm0, %v2361_v1  ;;  %v1138_v39 = vadd.f32 %v1137_v32, %v1136_v33  ;;  %v1151_v8 = vsel %vm1121_vm2, %v1120_v58, 0.0  ;;  %v1613_v14 = vsel %vm1611_vm4, %v1580_v3, 0.0  ;;  %v1615_v15 = vsel %vm1611_vm4, %v1581_v4, 0.0  ;;  %v1329_v17 = vld [vmem:[%s2652_s6 + $0xc] sm:$0x3] }
  0x4c   : > { %2175 = vmatprep.subr.mxu0 %v2361_v1  ;;  %v2098_v18 = vld [vmem:[%s2964_s12 + $0x6] ss:$0 sm:$0xff]  ;;  %v1614_v19 = vadd.f32 %v1613_v14, %v1612_v13  ;;  %v1584_v21 = vmul.f32 %v2097_v10, %v1328_v9  ;;  %v1617_v22 = vsel %vm1611_vm4, %v1582_v7, 0.0  ;;  %v1330_v23 = vld [vmem:[%s2652_s6 + $0xe] sm:$0x3]  ;;  %v1619_v29 = vsel %vm1611_vm4, %v1583_v11, 0.0 }
  0x4d   : > { %v1140_v44 = vadd.f32 %v1139_v35, %v1138_v39  ;;  %v2099_v24 = vld [vmem:[%s2964_s12 + $0x7] ss:$0 sm:$0xff]  ;;  %v1678_v27 = vld [vmem:[%s2966_s14] sm:$0x3]  ;;  %v1585_v28 = vmul.f32 %v2098_v18, %v1329_v17  ;;  %v1331_v30 = vld [vmem:[%s2652_s6 + $0x10] sm:$0x3] }
  0x4e   : > { %v1616_v25 = vadd.f32 %v1615_v15, %v1614_v19  ;;  %v2100_v31 = vld [vmem:[%s2964_s12 + $0x8] ss:$0 sm:$0xff]  ;;  %v1586_v33 = vmul.f32 %v2099_v24, %v1330_v23  ;;  %v1621_v34 = vsel %vm1611_vm4, %v1584_v21, 0.0  ;;  %v1332_v35 = vld [vmem:[%s2652_s6 + $0x12] sm:$0x3] }
  0x4f   : > { %v1142_v49 = vadd.f32 %v1141_v40, %v1140_v44  ;;  %v2101_v36 = vld [vmem:[%s2964_s12 + $0x9] ss:$0 sm:$0xff]  ;;  %v1587_v38 = vmul.f32 %v2100_v31, %v1331_v30  ;;  %v1623_v39 = vsel %vm1611_vm4, %v1585_v28, 0.0  ;;  %v1333_v40 = vld [vmem:[%s2652_s6 + $0x14] sm:$0x3] }
  0x50   : > { %v1618_v32 = vadd.f32 %v1617_v22, %v1616_v25  ;;  %v2102_v41 = vld [vmem:[%s2964_s12 + $0xa] ss:$0 sm:$0xff]  ;;  %v1588_v43 = vmul.f32 %v2101_v36, %v1332_v35  ;;  %v1334_v44 = vld [vmem:[%s2652_s6 + $0x16] sm:$0x3]  ;;  %v2103_v45 = vld [vmem:[%s2964_s12 + $0xb] ss:$0 sm:$0xff] }
  0x51   : > { %v1144_v57 = vadd.f32 %v1143_v47, %v1142_v49  ;;  %v1589_v47 = vmul.f32 %v2102_v41, %v1333_v40  ;;  %v1627_v48 = vsel %vm1611_vm4, %v1587_v38, 0.0  ;;  %v1335_v49 = vld [vmem:[%s2652_s6 + $0x18] sm:$0x3]  ;;  %v1590_v52 = vmul.f32 %v2103_v45, %v1334_v44  ;;  %v1336_v54 = vld [vmem:[%s2652_s6 + $0x1a] sm:$0x3] }
  0x52   : > { %v1620_v37 = vadd.f32 %v1619_v29, %v1618_v32  ;;  %v1629_v53 = vsel %vm1611_vm4, %v1588_v43, 0.0  ;;  %v2105_v55 = vld [vmem:[%s2964_s12 + $0xd] ss:$0 sm:$0xff]  ;;  %v2106_v60 = vld [vmem:[%s2964_s12 + $0xe] ss:$0 sm:$0xff] }
  0x53   : > { %v1146_v62 = vadd.f32 %v1145_v50, %v1144_v57  ;;  %v2104_v50 = vld [vmem:[%s2964_s12 + $0xc] ss:$0 sm:$0xff]  ;;  %v1631_v58 = vsel %vm1611_vm4, %v1589_v47, 0.0  ;;  %v1633_v63 = vsel %vm1611_vm4, %v1590_v52, 0.0  ;;  %v1338_v0 = vld [vmem:[%s2652_s6 + $0x1e] sm:$0x3] }
  0x54   : > { %v1622_v42 = vadd.f32 %v1621_v34, %v1620_v37  ;;  %v1591_v57 = vmul.f32 %v2104_v50, %v1335_v49  ;;  %v2107_v2 = vld [vmem:[%s2964_s12 + $0xf] ss:$0 sm:$0xff]  ;;  %v2108_v7 = vld [vmem:[%s2964_s12 + $0x10] ss:$0 sm:$0xff]  ;;  %v1340_v11 = vld [vmem:[%s2652_s6 + $0x22] sm:$0x3] }
  0x55   : > { %v1148_v6 = vadd.f32 %v1147_v59, %v1146_v62  ;;  %v1337_v59 = vld [vmem:[%s2652_s6 + $0x1c] sm:$0x3]  ;;  %v1592_v62 = vmul.f32 %v2105_v55, %v1336_v54  ;;  %v1594_v9 = vmul.f32 %v2107_v2, %v1338_v0  ;;  %v2110_v17 = vld [vmem:[%s2964_s12 + $0x12] ss:$0 sm:$0xff]  ;;  %v1342_v21 = vld [vmem:[%s2652_s6 + $0x26] sm:$0x3] }
  0x56   : > { %v1624_v46 = vadd.f32 %v1623_v39, %v1622_v42  ;;  %v1593_v4 = vmul.f32 %v2106_v60, %v1337_v59  ;;  %v2111_v22 = vld [vmem:[%s2964_s12 + $0x13] ss:$0 sm:$0xff]  ;;  %v1344_v31 = vld [vmem:[%s2652_s6 + $0x2a] sm:$0x3]  ;;  %v2113_v32 = vld [vmem:[%s2964_s12 + $0x15] ss:$0 sm:$0xff] }
  0x57   : > { %v1150_v12 = vadd.f32 %v1149_v5, %v1148_v6  ;;  %v1635_v5 = vsel %vm1611_vm4, %v1591_v57, 0.0  ;;  %v1339_v6 = vld [vmem:[%s2652_s6 + $0x20] sm:$0x3]  ;;  %v1637_v10 = vsel %vm1611_vm4, %v1592_v62, 0.0  ;;  %v1598_v29 = vmul.f32 %v2111_v22, %v1342_v21  ;;  %v1345_v36 = vld [vmem:[%s2652_s6 + $0x2c] sm:$0x3] }
  0x58   : > { %v1595_v14 = vmul.f32 %v2108_v7, %v1339_v6  ;;  %v1639_v15 = vsel %vm1611_vm4, %v1593_v4, 0.0  ;;  %v2114_v37 = vld [vmem:[%s2964_s12 + $0x16] ss:$0 sm:$0xff]  ;;  %v1600_v39 = vmul.f32 %v2113_v32, %v1344_v31  ;;  %v1346_v41 = vld [vmem:[%s2652_s6 + $0x2e] sm:$0x3] }
  0x59   : > { %v1152_v20 = vadd.f32 %v1151_v8, %v1150_v12  ;;  %v2109_v12 = vld [vmem:[%s2964_s12 + $0x11] ss:$0 sm:$0xff]  ;;  %v1649_v40 = vsel %vm1611_vm4, %v1598_v29, 0.0  ;;  %v2115_v42 = vld [vmem:[%s2964_s12 + $0x17] ss:$0 sm:$0xff] }
  0x5a   : > { %v1596_v19 = vmul.f32 %v2109_v12, %v1340_v11  ;;  %v1643_v25 = vsel %vm1611_vm4, %v1595_v14, 0.0  ;;  %v1347_v45 = vld [vmem:[%s2652_s6 + $0x30] sm:$0x3]  ;;  %v1653_v49 = vsel %vm1611_vm4, %v1600_v39, 0.0  ;;  %v1348_v50 = vld [vmem:[%s2652_s6 + $0x32] sm:$0x3] }
  0x5b   : > { %v1155_v26 = vadd.f32 %v1154_v16, %v1152_v20  ;;  %v1341_v16 = vld [vmem:[%s2652_s6 + $0x24] sm:$0x3]  ;;  %v1641_v20 = vsel %vm1611_vm4, %v1594_v9, 0.0  ;;  %v1349_v55 = vld [vmem:[%s2652_s6 + $0x34] sm:$0x3]  ;;  %v1236_v39 = vld [vmem:[%s2961_s9 + $0x8] sm:$0xff] }
  0x5c   : > { %v1597_v24 = vmul.f32 %v2110_v17, %v1341_v16  ;;  %v1645_v30 = vsel %vm1611_vm4, %v1596_v19, 0.0  ;;  %v1350_v60 = vld [vmem:[%s2652_s6 + $0x36] sm:$0x3]  ;;  %v1351_v2 = vld [vmem:[%s2652_s6 + $0x38] sm:$0x3] }
  0x5d   : > { %2168 = vmatmul.mubr.msk.f32.vlgmr.msra.gmra.mrb[2].mxu0 %vm1157_vm5, %v1155_v26  ;;  %v1343_v26 = vld [vmem:[%s2652_s6 + $0x28] sm:$0x3]  ;;  %v1352_v7 = vld [vmem:[%s2652_s6 + $0x3a] sm:$0x3]  ;;  %v1353_v12 = vld [vmem:[%s2652_s6 + $0x3c] sm:$0x3] }
  0x5e   : > { %2176 = vmatpush3.msk.msra.mxu0 %vm1683_vm6, %v1678_v27  ;;  %2177 = vmatprep.mubr.msk.f32.mxu0 %vm2362_vm0, %v2361_v1  ;;  %v1625_v1 = vsel %vm1611_vm4, %v1586_v33, 0.0  ;;  %v2112_v27 = vld [vmem:[%s2964_s12 + $0x14] ss:$0 sm:$0xff]  ;;  %v1647_v35 = vsel %vm1611_vm4, %v1597_v24, 0.0  ;;  %v1354_v17 = vld [vmem:[%s2652_s6 + $0x3e] sm:$0x3] }
  0x5f   : > { %v1626_v51 = vadd.f32 %v1625_v1, %v1624_v46  ;;  %v1599_v34 = vmul.f32 %v2112_v27, %v1343_v26  ;;  %v1601_v1 = vmul.f32 %v2114_v37, %v1345_v36  ;;  %v2116_v46 = vld [vmem:[%s2964_s12 + $0x18] ss:$0 sm:$0xff]  ;;  %v1235_v37 = vld [vmem:[%s2961_s9] sm:$0xff]  ;;  %s723_s6 = sld [smem:[#allocation2]] }
  0x61   : > { %v1628_v56 = vadd.f32 %v1627_v48, %v1626_v51  ;;  %v1651_v44 = vsel %vm1611_vm4, %v1599_v34, 0.0  ;;  %v1602_v48 = vmul.f32 %v2115_v42, %v1346_v41  ;;  %v2117_v51 = vld [vmem:[%s2964_s12 + $0x19] ss:$0 sm:$0xff]  ;;  %v1655_v54 = vsel %vm1611_vm4, %v1601_v1, 0.0  ;;  %v1757_v41 = vld [vmem:[%s2965_s13] sm:$0xff] }
  0x63   : > { %v1630_v61 = vadd.f32 %v1629_v53, %v1628_v56  ;;  %v1603_v53 = vmul.f32 %v2116_v46, %v1347_v45  ;;  %v2118_v56 = vld [vmem:[%s2964_s12 + $0x1a] ss:$0 sm:$0xff]  ;;  %v1657_v59 = vsel %vm1611_vm4, %v1602_v48, 0.0  ;;  %v665_v45 = vld [vmem:[%s628_s20 + $0x8] sm:$0xff]  ;;  %v664_v48 = vld [vmem:[%s628_s20] sm:$0xff] }
  0x64   : > { %v667_v46 = vld [vmem:[%s628_s20 + $0x18] sm:$0xff] }
  0x65   : > { %v1632_v3 = vadd.f32 %v1631_v58, %v1630_v61  ;;  %v1604_v58 = vmul.f32 %v2117_v51, %v1348_v50  ;;  %v2119_v61 = vld [vmem:[%s2964_s12 + $0x1b] ss:$0 sm:$0xff]  ;;  %v1659_v0 = vsel %vm1611_vm4, %v1603_v53, 0.0  ;;  %v2056_v53 = vld [vmem:[%s2954_s2 + $0x2] ss:$0 sm:$0xff] }
  0x67   : > { %v1634_v8 = vadd.f32 %v1633_v63, %v1632_v3  ;;  %v1605_v63 = vmul.f32 %v2118_v56, %v1349_v55  ;;  %v2120_v3 = vld [vmem:[%s2964_s12 + $0x1c] ss:$0 sm:$0xff]  ;;  %v1661_v6 = vsel %vm1611_vm4, %v1604_v58, 0.0  ;;  %v668_v56 = vld [vmem:[%s628_s20 + $0x20] sm:$0xff] }
  0x69   : > { %v1636_v13 = vadd.f32 %v1635_v5, %v1634_v8  ;;  %v1606_v5 = vmul.f32 %v2119_v61, %v1350_v60  ;;  %v2121_v8 = vld [vmem:[%s2964_s12 + $0x1d] ss:$0 sm:$0xff]  ;;  %v1663_v11 = vsel %vm1611_vm4, %v1605_v63, 0.0  ;;  %v2057_v61 = vld [vmem:[%s2954_s2 + $0x3] ss:$0 sm:$0xff] }
  0x6a   : > { %v671_v60 = vld [vmem:[%s628_s20 + $0x38] sm:$0xff] }
  0x6b   : > { %v1638_v18 = vadd.f32 %v1637_v10, %v1636_v13  ;;  %v1607_v10 = vmul.f32 %v2120_v3, %v1351_v2  ;;  %v2122_v13 = vld [vmem:[%s2964_s12 + $0x1e] ss:$0 sm:$0xff]  ;;  %v1665_v16 = vsel %vm1611_vm4, %v1606_v5, 0.0  ;;  %v670_v2 = vld [vmem:[%s628_s20 + $0x30] sm:$0xff] }
  0x6d   : > { %v1640_v23 = vadd.f32 %v1639_v15, %v1638_v18  ;;  %v1608_v15 = vmul.f32 %v2121_v8, %v1352_v7  ;;  %v2123_v18 = vld [vmem:[%s2964_s12 + $0x1f] ss:$0 sm:$0xff]  ;;  %v1667_v21 = vsel %vm1611_vm4, %v1607_v10, 0.0  ;;  %v706_v7 = vmul.f32 %v2057_v61, %v670_v2 }
  0x6f   : > { %v1642_v28 = vadd.f32 %v1641_v20, %v1640_v23  ;;  %v1609_v20 = vmul.f32 %v2122_v13, %v1353_v12  ;;  %v1610_v23 = vmul.f32 %v2123_v18, %v1354_v17  ;;  %v1669_v24 = vsel %vm1611_vm4, %v1608_v15, 0.0 }
  0x70   : > { %v714_v12 = vsel %vm708_vm8, %v706_v7, 0.0 }
  0x71   : > { %v1644_v33 = vadd.f32 %v1643_v25, %v1642_v28  ;;  %v1671_v26 = vsel %vm1611_vm4, %v1609_v20, 0.0  ;;  %v1673_v28 = vsel %vm1611_vm4, %v1610_v23, 0.0 }
  0x73   : > { %v1646_v38 = vadd.f32 %v1645_v30, %v1644_v33  ;;  %v1676_v30 = vstv %s2124_s26  ;;  %v892_v33 = vld [vmem:[%s2957_s5] sm:$0xff]  ;;  %s2280_s26 = sshll.u32 %s2363_s27, 4  ;;  %s2281_s26 = int_to_ptr.vmem [resolvable:$false] %s2280_s26 }
  0x74   : > { %2162 = vmatprep.mubr.msk.f32.mxu1 %vm799_vm1, %v892_v33 }
  0x75   : > { %v1648_v43 = vadd.f32 %v1647_v35, %v1646_v38  ;;  %v893_v35 = vld [vmem:[%s2957_s5 + $0x8] sm:$0xff] }
  0x77   : > { %v1650_v47 = vadd.f32 %v1649_v40, %v1648_v43  ;;  %v1758_v43 = vld [vmem:[%s2965_s13 + $0x8] sm:$0xff] }
  0x79   : > { %v1652_v52 = vadd.f32 %v1651_v44, %v1650_v47  ;;  %v2054_v44 = vld [vmem:[%s2954_s2] ss:$0 sm:$0xff]  ;;  %v2055_v47 = vld [vmem:[%s2954_s2 + $0x1] ss:$0 sm:$0xff] }
  0x7a   : > { %v701_v50 = vmul.f32 %v2054_v44, %v665_v45  ;;  %v703_v51 = vmul.f32 %v2055_v47, %v667_v46 }
  0x7b   : > { %v1654_v57 = vadd.f32 %v1653_v49, %v1652_v52  ;;  %v666_v49 = vld [vmem:[%s628_s20 + $0x10] sm:$0xff]  ;;  %v669_v52 = vld [vmem:[%s628_s20 + $0x28] sm:$0xff]  ;;  %s619_s20 = scalar_lea.vmem [#allocation5], %s2045_s29 }
  0x7c   : > { %v702_v55 = vmul.f32 %v2055_v47, %v666_v49  ;;  %v716_v58 = vsel %vm708_vm8, %v701_v50, 0.0  ;;  %s1863_s18 = sshll.u32 %s619_s20, 4  ;;  %s2897_s18 = int_to_ptr.vmem [resolvable:$true] %s1863_s18 }
  0x7d   : > { %v1656_v62 = vadd.f32 %v1655_v54, %v1654_v57  ;;  %v700_v54 = vmul.f32 %v2054_v44, %v664_v48  ;;  %v705_v57 = vmul.f32 %v2056_v53, %v669_v52  ;;  %s2276_s21 = scalar_lea.vmem %s2897_s18, 256  ;;  %p2283_p0 = scmp.lt.s32.totalorder %s2897_s18, %s2281_s26 }
  0x7e   : > { %p2277_p10 = scmp.ne.s32.totalorder %s2897_s18, %s2276_s21 }
  0x7f   : > { %v1658_v4 = vadd.f32 %v1657_v59, %v1656_v62  ;;  %v717_v59 = vsel %vm708_vm8, %v703_v51, 0.0  ;;  %v704_v62 = vmul.f32 %v2056_v53, %v668_v56  ;;  %v709_v63 = vsel %vm708_vm8, %v700_v54, 0.0 }
  0x80   : > { %v718_v3 = vadd.f32 %v717_v59, %v716_v58  ;;  %v719_v5 = vsel %vm708_vm8, %v705_v57, 0.0  ;;  %p2278_p11 = pnand %p2277_p10, %p2486_p4 }
  0x81   : > { %v1660_v9 = vadd.f32 %v1659_v0, %v1658_v4  ;;  %v710_v0 = vsel %vm708_vm8, %v702_v55, 0.0  ;;  %v707_v4 = vmul.f32 %v2057_v61, %v671_v60  ;;  %v712_v8 = vsel %vm708_vm8, %v704_v62, 0.0 }
  0x82   : > { %p2279_p13 = pneg %p2278_p11 }
  0x83   : > { %v1662_v14 = vadd.f32 %v1661_v6, %v1660_v9  ;;  %v711_v6 = vadd.f32 %v710_v0, %v709_v63  ;;  %v720_v9 = vadd.f32 %v719_v5, %v718_v3  ;;  %v721_v10 = vsel %vm708_vm8, %v707_v4, 0.0 }
  0x85   : > { %v1664_v19 = vadd.f32 %v1663_v11, %v1662_v14  ;;  %v713_v11 = vadd.f32 %v712_v8, %v711_v6  ;;  %v722_v13 = vadd.f32 %v721_v10, %v720_v9  ;;  %v724_v14 = vstv %s723_s6  ;;  %s2282_s6 = scalar_lea.vmem %s2281_s26, 512 }
  0x86   : > { %p2284_p1 = scmp.lt.s32.totalorder %s2282_s6, %s2276_s21 }
  0x87   : > { %v1666_v22 = vadd.f32 %v1665_v16, %v1664_v19  ;;  %v715_v15 = vadd.f32 %v714_v12, %v713_v11  ;;  %v726_v16 = vadd.f32 %v724_v14, %v722_v13 }
  0x88   : > { %p2285_p2 = por %p2284_p1, %p2283_p0 }
  0x89   : > { %v1668_v25 = vadd.f32 %v1667_v21, %v1666_v22  ;;  %v725_v17 = vadd.f32 %v724_v14, %v715_v15 }
  0x8a   : > { %p2286_p3 = pnand %p2285_p2, %p2279_p13 }
  0x8b   : > { %v1670_v27 = vadd.f32 %v1669_v24, %v1668_v25 }
  0x8d   : > { %v1672_v29 = vadd.f32 %v1671_v26, %v1670_v27 }
  0x8f   : > { %v1674_v31 = vadd.f32 %v1673_v28, %v1672_v29 }
  0x91   : > { %v1677_v32 = vadd.f32 %v1676_v30, %v1674_v31 }
  0x93   : > { %2178 = vmatmul.mubr.msk.f32.vlgmr.msra.gmra.mrb[4].mxu0 %vm1679_vm7, %v1677_v32 }
 0x11d   : > { %v888_v34 = vpop.f32.mrb[0].mxu0 }
 0x11e   : > { %2160 = vmatprep.subr.mxu1 %v888_v34  ;;  %v2159_v36 = vpop.f32.mrb[1].mxu0 }
 0x11f   : > { %2161 = vmatpush3.msra.mxu1 %v888_v34 }
 0x120   : > { %2163 = vmatmul.mubr.msk.f32.vlgmr.msra.gmra.mrb[0].mxu1 %vm799_vm1, %v893_v35 }
 0x121   : > { %2172 = vmatprep.mubr.msk.f32.mxu1 %vm1157_vm5, %v1235_v37 }
 0x130   : > { %v1231_v38 = vpop.f32.mrb[2].mxu0 }
 0x131   : > { %v2169_v40 = vpop.f32.mrb[3].mxu0  ;;  %2170 = vmatprep.subr.msk.mxu1 %vm1161_vm3, %v1231_v38 }
 0x132   : > { %2171 = vmatpush3.msk.msra.mxu1 %vm1161_vm3, %v1231_v38 }
 0x133   : > { %2173 = vmatmul.mubr.msk.f32.vlgmr.msra.gmra.mrb[0].mxu1 %vm1157_vm5, %v1236_v39 }
 0x134   : > { %2182 = vmatprep.mubr.msk.f32.mxu1 %vm1679_vm7, %v1757_v41 }
 0x166   : > { %v1753_v42 = vpop.f32.mrb[4].mxu0 }
 0x167   : > { %v2179_v1 = vpop.f32.mrb[5].mxu0  ;;  %2180 = vmatprep.subr.msk.mxu1 %vm1683_vm6, %v1753_v42 }
 0x168   : > { %2181 = vmatpush3.msk.msra.mxu1 %vm1683_vm6, %v1753_v42 }
 0x169   : > { %2183 = vmatmul.mubr.msk.f32.vlgmr.msra.gmra.mrb[0].mxu1 %vm1679_vm7, %v1758_v43 }
 0x23c   : > { %v2184_v18 = vpop.f32.mrb[0].mxu1 }
 0x23d   : > { %v2185_v19 = vadd.f32 %v2184_v18, %v726_v16  ;;  %v1834_v20 = vpop.f32.mrb[1].mxu1 }
 0x23e   : > { %v2186_v21 = vadd.f32 %v1834_v20, %v725_v17 }
 0x23f   : > { %1846 = vst.msk [vmem:[%s619_s20 + $0x8] sm:$0xff] %vm708_vm8, %v2185_v19 }
 0x240   : > { %1845 = vst.msk [vmem:[%s619_s20] sm:$0xff] %vm708_vm8, %v2186_v21 }
 0x241   : > { %2289 = shalt.err (!%p2286_p3)
}
 0x242   : > { %s2290_s17 = scalar_lea.hbm %s2902_s25, 256  ;;  %s2294_s0 = scalar_lea.hbm %s2967_s15, 512 }
 0x243   : > { %p2291_p5 = scmp.ne.s32.totalorder %s2902_s25, %s2290_s17  ;;  %p2295_p9 = scmp.lt.u32.totalorder %s2902_s25, %s2967_s15 }
 0x244   : > { %p2296_p12 = scmp.lt.u32.totalorder %s2294_s0, %s2290_s17  ;;  %p2298_p11 = scmp.lt.u32.totalorder %s2290_s17, %s2902_s25 }
 0x245   : > { %p2292_p6 = pnand %p2291_p5, %p2486_p4 }
 0x246   : > { %p2297_p10 = por %p2296_p12, %p2295_p9 }
 0x247   : > { %p2293_p7 = pneg %p2292_p6 }
 0x248   : > { %p2299_p13 = por %p2298_p11, %p2297_p10 }
 0x24a   : > { %p2300_p0 = pnand %p2299_p13, %p2293_p7 }
 0x24c   : > { %2303 = shalt.err (!%p2300_p0)
}
 0x24d   : > { %s2364_s21 = smov 128   ;;  %s2365_s27 = smov 8  }
 0x24e   : > { %2195 = dma.vmem_to_hbm [thread:$0]  (%p2486_p4), %s2897_s18, 256, %s2902_s25, %s2906_s16, %s2364_s21, %s2364_s21, %s2365_s27  }
 0x24f PF: > { %s2985_s26 = sld [smem:[#allocation8_spill]]  ;;  %p2207_p1 = scmp.ge.s32.totalorder %s2358_s23, 2 }
 0x251   : > { %p2202_p2 = pnand %p2207_p1, %p2493_p8 }
 0x255   : > { %s1878_s6 = sand.u32 1, %s2985_s26  }
 0x256   : > { %s1879_s17 = scalar_lea.sflag [#allocation3], %s1878_s6 }
 0x257   : > { %2333 = dma.done.wait (!%p2202_p2), %s1879_s17, 256  }
 0x258   : > { %2335 = vsyncadd (!%p2202_p2), %s1879_s17, 4294967040  ;;  %s29_s23 = sadd.s32 1, %s2358_s23   ;;  %s2986_s29 = sld [smem:[#allocation9_spill]] }
 0x259   : > { %p26_p3 = scmp.ge.s32.totalorder %s29_s23, 4   ;;  %s2987_s20 = sld [smem:[#allocation12_spill]] }
 0x25a   : > { %s2988_s21 = sld [smem:[#allocation10_spill]]  ;;  %s2989_s22 = sld [smem:[#allocation11_spill]] }
 0x25b   : > { %s2990_s18 = smov %s2342_s19  ;;  %28 = sbr.rel (!%p26_p3) target bundleno = 8 (0x8), region = 138 }
 0x25e   : > { %s2991_s19 = smov %s2986_s29 }
 0x262   :  { %1884 = vsyncpa [#allocation3], 1 }
 0x263   :  { %1886 = vsyncpa [#allocation3 + $0x1], 1 }
 0x264   :  { %1887 = vsyncpa [#allocation4], 1 }
 0x265   :  { %1889 = vsyncpa [#allocation4 + $0x1], 1 }

</bundles_post_ra>
